<compile_context>
chip_gen: v6e
topology: v6e:2x2x1
jax: 0.10.0
libtpu: 0.0.40
codegen_flags: <defaults>
</compile_context>

<pallas_src>
import functools

import jax
import jax.numpy as jnp
from jax.experimental import pallas as pl
from jax.experimental.pallas import tpu as pltpu

# 1M f32 = 4 MiB per output block -> 8 MiB double-buffered (VMEM-safe everywhere).
_MAX_BLOCK_ELEMS = 1024 * 1024
# Above this many elements, split into >= 2 blocks so v7x's two TensorCores
# each get a share of the writeback (harmless on v5e/v6e).
_SPLIT_THRESHOLD = 512 * 1024


def _fill_kernel(value_ref, o_ref):
    # value_ref: (1,) f32 in SMEM; o_ref: (1, block) f32 tile in VMEM.
    o_ref[...] = jnp.full(o_ref.shape, value_ref[0], dtype=o_ref.dtype)


def _round_up(n, m):
    return ((n + m - 1) // m) * m


@functools.partial(
    jax.jit,
    static_argnames=("batch_size", "output_type", "split_threshold", "max_block_elems"),
)
def _constant_fill(value, batch_size, output_type,
                   split_threshold=_SPLIT_THRESHOLD,
                   max_block_elems=_MAX_BLOCK_ELEMS):
    """Fill a (B,) / (B,1) float32 array with traced scalar `value` via Pallas."""
    out_shape = (batch_size, 1) if output_type == "classifier" else (batch_size,)
    if batch_size == 0:
        return jnp.zeros(out_shape, jnp.float32)

    # Traced scalar -> no recompilation per distinct constant value.
    value_smem = jnp.reshape(value, (1,)).astype(jnp.float32)

    n = batch_size
    if n <= split_threshold:
        block = n                                    # single step; full-dim block is legal
    else:
        block = _round_up(pl.cdiv(n, 2), 128)        # >= 2 blocks, lane-aligned
        block = min(block, max_block_elems)
    grid = (pl.cdiv(n, block),)                      # last block masked if partial

    filled = pl.pallas_call(
        _fill_kernel,
        out_shape=jax.ShapeDtypeStruct((1, n), jnp.float32),
        grid=grid,
        in_specs=[pl.BlockSpec(memory_space=pltpu.MemorySpace.SMEM)],
        out_specs=pl.BlockSpec((1, block), lambda i: (0, i)),
        compiler_params=pltpu.CompilerParams(
            dimension_semantics=("parallel",),
        ),
    )(value_smem)

    # Free metadata reshapes back to the torch output shapes; no slicing.
    return filled.reshape(out_shape)


def constant_model_forward(x, batch_size, *, output_type="regressor", value=1.0):
    """JAX/Pallas equivalent of ConstantModel.forward.

    `x` is accepted for signature parity with the PyTorch module (only its
    device mattered there); it is not fed into the jitted computation.
    """
    del x  # values (and array) unused, matching torch semantics
    # TODO(synk): a plain `jnp.full((batch_size,), value)` would fuse into
    # consumers with zero extra HBM traffic; the Pallas path is kept because
    # the exercise requires a kernel.
    return _constant_fill(
        jnp.float32(value), batch_size=batch_size, output_type=output_type
    )


if __name__ == "__main__":
    key = jax.random.PRNGKey(0)
    batch_size = 2
    # Small NCHW-style input, ignored by the forward pass (as in the torch module).
    x = jax.random.normal(key, (batch_size, 4, 16, 16), dtype=jnp.float32)

    # Regressor output: shape (B,)
    out_reg = constant_model_forward(x, batch_size, output_type="regressor", value=1.0)
    out_reg = jax.block_until_ready(out_reg)
    assert out_reg.shape == (batch_size,)
    assert out_reg.dtype == jnp.float32
    assert bool(jnp.all(out_reg == 1.0))

    # Classifier output: shape (B, 1)
    out_cls = constant_model_forward(x, batch_size, output_type="classifier", value=3.5)
    out_cls = jax.block_until_ready(out_cls)
    assert out_cls.shape == (batch_size, 1)
    assert out_cls.dtype == jnp.float32
    assert bool(jnp.all(out_cls == 3.5))

    # Same shapes, different value: traced scalar -> reuses the compiled kernel.
    out_val = jax.block_until_ready(
        constant_model_forward(x, batch_size, output_type="regressor", value=-7.25)
    )
    assert bool(jnp.all(out_val == -7.25))

    # Larger batch, single-block full-dim path.
    big_batch = 5000
    out_big = jax.block_until_ready(
        constant_model_forward(x, big_batch, output_type="regressor", value=-2.0)
    )
    assert out_big.shape == (big_batch,)
    assert bool(jnp.all(out_big == -2.0))

    # Multi-block path with a masked partial final block (forced small threshold).
    out_mb = jax.block_until_ready(
        _constant_fill(jnp.float32(0.5), batch_size=big_batch,
                       output_type="regressor", split_threshold=1024)
    )
    assert out_mb.shape == (big_batch,)
    assert bool(jnp.all(out_mb == 0.5))

    print("KERNEL_OK")
</pallas_src>

<mosaic_0001>
module attributes {stable_mosaic.version = 11 : i64} {
  func.func @_fill_kernel(%arg0: i32, %arg1: memref<1xf32, #tpu.memory_space<smem>>, %arg2: memref<1x2xf32, #tpu.memory_space<vmem>>) attributes {dimension_semantics = [#tpu.dimension_semantics<parallel>], iteration_bounds = array<i64: 1>, scalar_prefetch = 0 : i64, scratch_operands = 0 : i64, tpu.core_type = #tpu.core_type<tc>, window_params = [{transform_indices = @transform_0, window_bounds = array<i64: 1>}, {transform_indices = @transform_1, window_bounds = array<i64: 1, 2>}]} {
    %c0 = arith.constant 0 : index
    %0 = memref.load %arg1[%c0] : memref<1xf32, #tpu.memory_space<smem>>
    %1 = vector.broadcast %0 : f32 to vector<1x2xf32>
    %c0_0 = arith.constant 0 : index
    %c0_1 = arith.constant 0 : index
    %2 = vector.load %arg2[%c0_0, %c0_1] : memref<1x2xf32, #tpu.memory_space<vmem>>, vector<1x2xf32>
    tpu.vector_store %arg2[%c0_0, %c0_1], %1 {strides = array<i32>} : memref<1x2xf32, #tpu.memory_space<vmem>>, vector<1x2xf32>,
    return
  }
  func.func @transform_0(%arg0: i32) -> i32 {
    %c0_i32 = arith.constant 0 : i32
    %c0_i32_0 = arith.constant 0 : i32
    return %c0_i32 : i32
  }
  func.func @transform_1(%arg0: i32) -> (i32, i32) {
    %c0_i32 = arith.constant 0 : i32
    %c0_i32_0 = arith.constant 0 : i32
    return %c0_i32, %arg0 : i32, i32
  }
}

</mosaic_0001>

<bundles_post_ra>
// kernel: _constant_fill.1
= control target key start
LH: loop header
LB: loop body
LE: loop exit
PB: predicated region body
PF: predicated region fallthrough
CT: control target
= control target key end

     0   :  { %vm12_vm0 = vcmask 8192   ;;  %s68_s0 = inlined_call_operand.<no memory space> [shape: f32[1], index: 0, kind: input, shape index: {}]   ;;  %s69_s1 = inlined_call_operand.hbm [shape: f32[1,2], index: 1, kind: output, shape index: {}]  }
   0x1   :  { %v11_v0 = vstv %s68_s0 }
   0x2   :  { %7 = vsyncpa [#allocation4], 0  ;;  %13 = vst.msk [vmem:[#allocation3] sm:$0x1] %vm12_vm0, %v11_v0  ;;  %s51_s8 = smov [#allocation3]  }
   0x3   :  { %s20_s9 = sshll.u32 %s51_s8, 4  ;;  %s21_s9 = int_to_ptr.vmem [resolvable:$true] %s20_s9 }
   0x4   :  { %s29_s10 = scalar_lea.vmem %s21_s9, 16  ;;  %s33_s11 = scalar_lea.vmem %s21_s9, 32 }
   0x5   :  { %p30_p0 = scmp.ne.s32.totalorder %s21_s9, %s29_s10  ;;  %p34_p1 = scmp.lt.s32.totalorder %s21_s9, %s21_s9 }
   0x6   :  { %p35_p2 = scmp.lt.s32.totalorder %s33_s11, %s29_s10 }
   0x8   :  { %p36_p3 = por %p35_p2, %p34_p1 }
   0xa   :  { %p37_p4 = pnand %p36_p3, %p30_p0 }
   0xc   :  { %40 = shalt.err (!%p37_p4)
}
   0xd   :  { %23 = dma.vmem_to_hbm [thread:$0]  %s21_s9, 16, %s69_s1, [#allocation4]  }
   0xe   :  { %49 = dma.done.wait [#allocation4], 16  }
   0xf   :  { %50 = vsyncadd [#allocation4], 4294967280 }
  0x10   :  { %27 = vsyncpa [#allocation4], 1 }

</bundles_post_ra>
